<compile_context>
chip_gen: v7x
topology: tpu7x:2x2x1
jax: 0.10.0
libtpu: 0.0.40
codegen_flags: <defaults>
</compile_context>

<pallas_src>
import functools
import math

import jax
import jax.numpy as jnp
from jax.experimental import pallas as pl
from jax.experimental.pallas import tpu as pltpu


VMEM_LIMIT = 32 * 1024 * 1024  # safe on v5e/v6e/v7x; toy tiles are far below this


# --------------------------------------------------------------------------
# In-kernel helpers
# --------------------------------------------------------------------------

def _ln(x, g, b):
    # BERT LayerNorm (eps=1e-12) over the last axis, f32 statistics.
    mean = jnp.mean(x, axis=-1, keepdims=True)
    xc = x - mean
    var = jnp.mean(xc * xc, axis=-1, keepdims=True)
    return xc * jax.lax.rsqrt(var + 1e-12) * g + b


def _bf16_dot(a, w_ref, b_ref):
    # bf16 MXU matmul with f32 accumulation + f32 bias.
    return (jnp.dot(a.astype(jnp.bfloat16), w_ref[...],
                    preferred_element_type=jnp.float32) + b_ref[...])


# --------------------------------------------------------------------------
# Pallas kernels
# --------------------------------------------------------------------------

def _layernorm_kernel(x_ref, g_ref, b_ref, o_ref):
    o_ref[...] = _ln(x_ref[...], g_ref[...], b_ref[...])


def layernorm(x, gamma, beta):
    n, d = x.shape
    return pl.pallas_call(
        _layernorm_kernel,
        out_shape=jax.ShapeDtypeStruct((n, d), jnp.float32),
    )(x, gamma, beta)


def _encoder_layer_kernel(x_ref, mask_ref,
                          wqkv_ref, bqkv_ref, wo_ref, bo_ref,
                          ln1g_ref, ln1b_ref,
                          w1_ref, b1_ref, w2_ref, b2_ref,
                          ln2g_ref, ln2b_ref,
                          o_ref, *, n_heads, scale):
    # One batch element per grid step; x_ref is the (S, D) token slab.
    x = x_ref[...]                                   # (S, D) f32
    S, D = x.shape
    dh = D // n_heads
    add_mask = mask_ref[0]                           # (1, S) additive key-pad mask

    # ---- fused QKV projection (one (D, 3D) matmul) ----
    qkv = _bf16_dot(x, wqkv_ref, bqkv_ref)           # (S, 3D) f32
    q, k, v = qkv[:, :D], qkv[:, D:2 * D], qkv[:, 2 * D:]

    # ---- per-head attention, all in VMEM (no HBM head transposes) ----
    # TODO(synk): with head_dim=8 the contractions are far below MXU width; at
    # real BERT sizes (dh=64) heads should additionally be batched into
    # MXU-shaped contractions.
    ctx_heads = []
    for h in range(n_heads):
        sl = slice(h * dh, (h + 1) * dh)
        qh = q[:, sl].astype(jnp.bfloat16)
        kh = k[:, sl].astype(jnp.bfloat16)
        vh = v[:, sl].astype(jnp.bfloat16)
        scores = jax.lax.dot_general(
            qh, kh, (((1,), (1,)), ((), ())),
            preferred_element_type=jnp.float32) * scale + add_mask   # (S, S) f32
        m = jnp.max(scores, axis=-1, keepdims=True)
        p = jnp.exp(scores - m)
        denom = jnp.sum(p, axis=-1, keepdims=True)
        ctx_h = jnp.dot(p.astype(jnp.bfloat16), vh,
                        preferred_element_type=jnp.float32)          # (S, dh) f32
        ctx_heads.append(ctx_h * pl.reciprocal(denom, approx=True))
    ctx = jnp.concatenate(ctx_heads, axis=-1)        # (S, D) — head merge in VMEM

    # ---- output projection + residual + LayerNorm ----
    attn_out = _bf16_dot(ctx, wo_ref, bo_ref)
    x1 = _ln(attn_out + x, ln1g_ref[...], ln1b_ref[...])

    # ---- FFN + residual + LayerNorm ----
    h1 = _bf16_dot(x1, w1_ref, b1_ref)
    # TODO(synk): HF BERT uses exact erf-GELU; tanh-approximate GELU is used for
    # guaranteed Mosaic lowering.
    h1 = jax.nn.gelu(h1, approximate=True)
    ff = _bf16_dot(h1, w2_ref, b2_ref)
    o_ref[...] = _ln(ff + x1, ln2g_ref[...], ln2b_ref[...])


def encoder_layer(x, add_mask, layer, n_heads):
    BS, D = x.shape
    B = add_mask.shape[0]
    S = BS // B
    dh = D // n_heads
    kern = functools.partial(_encoder_layer_kernel,
                             n_heads=n_heads, scale=1.0 / math.sqrt(dh))

    def resident(a):  # whole-weight block, same index every grid step -> stays in VMEM
        return pl.BlockSpec(a.shape, lambda b: (0, 0))

    in_specs = [
        pl.BlockSpec((S, D), lambda b: (b, 0)),        # per-batch token slab
        pl.BlockSpec((1, 1, S), lambda b: (b, 0, 0)),  # per-batch additive mask
        resident(layer['wqkv']), resident(layer['bqkv']),
        resident(layer['wo']), resident(layer['bo']),
        resident(layer['ln1_g']), resident(layer['ln1_b']),
        resident(layer['w1']), resident(layer['b1']),
        resident(layer['w2']), resident(layer['b2']),
        resident(layer['ln2_g']), resident(layer['ln2_b']),
    ]
    return pl.pallas_call(
        kern,
        grid=(B,),
        in_specs=in_specs,
        out_specs=pl.BlockSpec((S, D), lambda b: (b, 0)),
        out_shape=jax.ShapeDtypeStruct((BS, D), jnp.float32),
        compiler_params=pltpu.CompilerParams(
            dimension_semantics=("parallel",),
            vmem_limit_bytes=VMEM_LIMIT),
    )(x, add_mask, layer['wqkv'], layer['bqkv'], layer['wo'], layer['bo'],
      layer['ln1_g'], layer['ln1_b'], layer['w1'], layer['b1'],
      layer['w2'], layer['b2'], layer['ln2_g'], layer['ln2_b'])


def _classifier_kernel(x_ref, w1_ref, b1_ref, w2_ref, b2_ref, o_ref):
    # Linear -> ReLU -> Linear -> softmax; logits padded to a lane-dense width,
    # padded columns carry a -1e9 bias so softmax is exact on the real classes.
    h = _bf16_dot(x_ref[...], w1_ref, b1_ref)
    h = jnp.maximum(h, 0.0)
    logits = _bf16_dot(h, w2_ref, b2_ref)            # (B, PAD) f32
    m = jnp.max(logits, axis=-1, keepdims=True)
    p = jnp.exp(logits - m)
    denom = jnp.sum(p, axis=-1, keepdims=True)
    o_ref[...] = p * pl.reciprocal(denom, approx=True)


def classifier_head(cls, w1, b1, w2p, b2p, d_out):
    B = cls.shape[0]
    pad = w2p.shape[1]
    probs_pad = pl.pallas_call(
        _classifier_kernel,
        out_shape=jax.ShapeDtypeStruct((B, pad), jnp.float32),
        compiler_params=pltpu.CompilerParams(vmem_limit_bytes=VMEM_LIMIT),
    )(cls, w1, b1, w2p, b2p)
    return probs_pad[:, :d_out]


# --------------------------------------------------------------------------
# Parameters (deterministic synthetic init; no checkpoint loading)
# --------------------------------------------------------------------------

def init_params(key, *, vocab=100, max_pos=16, type_vocab=2, d=32,
                n_layers=2, n_heads=4, d_ff=64, h_cls=16, d_out=2,
                d_out_pad=128):
    def nrm(k, shape, dtype=jnp.float32):
        return (0.02 * jax.random.normal(k, shape, dtype=jnp.float32)).astype(dtype)

    keys = jax.random.split(key, 8 + n_layers)
    params = {
        'word_emb': nrm(keys[0], (vocab, d)),
        'pos_emb': nrm(keys[1], (max_pos, d)),
        'type_emb': nrm(keys[2], (type_vocab, d)),
        'emb_ln_g': jnp.ones((1, d), jnp.float32),
        'emb_ln_b': jnp.zeros((1, d), jnp.float32),
        'cls_w1': nrm(keys[3], (d, h_cls), jnp.bfloat16),
        'cls_b1': jnp.zeros((1, h_cls), jnp.float32),
        'layers': [],
    }
    # Classifier output matmul padded to a lane-dense width (128):
    w2 = nrm(keys[4], (h_cls, d_out))
    w2p = jnp.zeros((h_cls, d_out_pad), jnp.float32).at[:, :d_out].set(w2)
    b2p = jnp.full((1, d_out_pad), -1e9, jnp.float32).at[:, :d_out].set(0.0)
    params['cls_w2p'] = w2p.astype(jnp.bfloat16)
    params['cls_b2p'] = b2p

    for li in range(n_layers):
        lk = jax.random.split(keys[8 + li], 6)
        wq, wk, wv = nrm(lk[0], (d, d)), nrm(lk[1], (d, d)), nrm(lk[2], (d, d))
        params['layers'].append({
            'wqkv': jnp.concatenate([wq, wk, wv], axis=1).astype(jnp.bfloat16),
            'bqkv': jnp.zeros((1, 3 * d), jnp.float32),
            'wo': nrm(lk[3], (d, d), jnp.bfloat16),
            'bo': jnp.zeros((1, d), jnp.float32),
            'ln1_g': jnp.ones((1, d), jnp.float32),
            'ln1_b': jnp.zeros((1, d), jnp.float32),
            'w1': nrm(lk[4], (d, d_ff), jnp.bfloat16),
            'b1': jnp.zeros((1, d_ff), jnp.float32),
            'w2': nrm(lk[5], (d_ff, d), jnp.bfloat16),
            'b2': jnp.zeros((1, d), jnp.float32),
            'ln2_g': jnp.ones((1, d), jnp.float32),
            'ln2_b': jnp.zeros((1, d), jnp.float32),
        })
    return params


# --------------------------------------------------------------------------
# Forward pass (mirrors BertClassifier.forward)
# --------------------------------------------------------------------------

@functools.partial(jax.jit, static_argnames=("n_heads", "d_out"))
def bert_classifier_forward(params, input_ids, attention_mask, *, n_heads, d_out):
    B, S = input_ids.shape
    D = params['word_emb'].shape[1]

    # ---- Embeddings (word + position + token_type=0), then LayerNorm kernel ----
    x = (params['word_emb'][input_ids]
         + params['pos_emb'][jnp.arange(S)][None, :, :]
         + params['type_emb'][0][None, None, :])
    x = x.reshape(B * S, D).astype(jnp.float32)
    x = layernorm(x, params['emb_ln_g'], params['emb_ln_b'])
    # TODO(synk): dropout layers are no-ops in eval mode and are omitted.

    # Extended additive attention mask: 0 where attended, -10000 where padded.
    add_mask = ((1.0 - attention_mask.astype(jnp.float32)) * -10000.0).reshape(B, 1, S)

    # ---- Encoder layers: one fused Pallas kernel per layer ----
    for layer in params['layers']:
        x = encoder_layer(x, add_mask, layer, n_heads)

    # ---- outputs[0][:, 0, :]  (CLS token of last_hidden_state) ----
    cls = x.reshape(B, S, D)[:, 0, :]

    # ---- classifier: Linear -> ReLU -> Linear -> softmax(dim=1) ----
    return classifier_head(cls, params['cls_w1'], params['cls_b1'],
                           params['cls_w2p'], params['cls_b2p'], d_out)


# --------------------------------------------------------------------------

if __name__ == "__main__":
    key = jax.random.PRNGKey(0)
    pkey, ikey = jax.random.split(key)

    B, S, D_OUT, N_HEADS = 2, 8, 2, 4
    params = init_params(pkey, vocab=100, max_pos=16, d=32,
                         n_layers=2, n_heads=N_HEADS, d_ff=64, h_cls=16,
                         d_out=D_OUT)

    input_ids = jax.random.randint(ikey, (B, S), 0, 100, dtype=jnp.int32)
    attention_mask = jnp.array([[1, 1, 1, 1, 1, 1, 1, 1],
                                [1, 1, 1, 1, 1, 0, 0, 0]], dtype=jnp.int32)

    probs = bert_classifier_forward(params, input_ids, attention_mask,
                                    n_heads=N_HEADS, d_out=D_OUT)
    jax.block_until_ready(probs)

    assert probs.shape == (B, D_OUT)
    print("KERNEL_OK")
</pallas_src>

<mosaic_0001>
module attributes {stable_mosaic.version = 11 : i64} {
  func.func @_layernorm_kernel(%arg0: memref<16x32xf32, #tpu.memory_space<vmem>>, %arg1: memref<1x32xf32, #tpu.memory_space<vmem>>, %arg2: memref<1x32xf32, #tpu.memory_space<vmem>>, %arg3: memref<16x32xf32, #tpu.memory_space<vmem>>) attributes {dimension_semantics = [], scalar_prefetch = 0 : i64, scratch_operands = 0 : i64, tpu.core_type = #tpu.core_type<tc>} {
    %c0 = arith.constant 0 : index
    %c0_0 = arith.constant 0 : index
    %0 = vector.load %arg0[%c0, %c0_0] : memref<16x32xf32, #tpu.memory_space<vmem>>, vector<16x32xf32>
    %c0_1 = arith.constant 0 : index
    %c0_2 = arith.constant 0 : index
    %1 = vector.load %arg1[%c0_1, %c0_2] : memref<1x32xf32, #tpu.memory_space<vmem>>, vector<1x32xf32>
    %c0_3 = arith.constant 0 : index
    %c0_4 = arith.constant 0 : index
    %2 = vector.load %arg2[%c0_3, %c0_4] : memref<1x32xf32, #tpu.memory_space<vmem>>, vector<1x32xf32>
    %cst = arith.constant dense<0.000000e+00> : vector<16xf32>
    %3 = vector.multi_reduction <add>, %0, %cst [1] : vector<16x32xf32> to vector<16xf32>
    %4 = vector.shape_cast %3 : vector<16xf32> to vector<16x1xf32>
    %cst_5 = arith.constant 3.200000e+01 : f32
    %5 = vector.broadcast %cst_5 : f32 to vector<16x1xf32>
    %6 = arith.divf %4, %5 : vector<16x1xf32>
    %7 = vector.broadcast %6 : vector<16x1xf32> to vector<16x32xf32>
    %8 = arith.subf %0, %7 : vector<16x32xf32>
    %9 = arith.mulf %8, %8 : vector<16x32xf32>
    %cst_6 = arith.constant dense<0.000000e+00> : vector<16xf32>
    %10 = vector.multi_reduction <add>, %9, %cst_6 [1] : vector<16x32xf32> to vector<16xf32>
    %11 = vector.shape_cast %10 : vector<16xf32> to vector<16x1xf32>
    %cst_7 = arith.constant 3.200000e+01 : f32
    %12 = vector.broadcast %cst_7 : f32 to vector<16x1xf32>
    %13 = arith.divf %11, %12 : vector<16x1xf32>
    %cst_8 = arith.constant 9.99999996E-13 : f32
    %14 = vector.broadcast %cst_8 : f32 to vector<16x1xf32>
    %15 = arith.addf %13, %14 : vector<16x1xf32>
    %16 = math.rsqrt %15 : vector<16x1xf32>
    %17 = vector.broadcast %16 : vector<16x1xf32> to vector<16x32xf32>
    %18 = arith.mulf %8, %17 : vector<16x32xf32>
    %19 = vector.broadcast %1 : vector<1x32xf32> to vector<16x32xf32>
    %20 = arith.mulf %18, %19 : vector<16x32xf32>
    %21 = vector.broadcast %2 : vector<1x32xf32> to vector<16x32xf32>
    %22 = arith.addf %20, %21 : vector<16x32xf32>
    %c0_9 = arith.constant 0 : index
    %c0_10 = arith.constant 0 : index
    %23 = vector.load %arg3[%c0_9, %c0_10] : memref<16x32xf32, #tpu.memory_space<vmem>>, vector<16x32xf32>
    tpu.vector_store %arg3[%c0_9, %c0_10], %22 {strides = array<i32>} : memref<16x32xf32, #tpu.memory_space<vmem>>, vector<16x32xf32>,
    return
  }
}

module attributes {stable_mosaic.version = 11 : i64} {
  func.func @_encoder_layer_kernel(%arg0: i32, %arg1: memref<8x32xf32, #tpu.memory_space<vmem>>, %arg2: memref<1x1x8xf32, #tpu.memory_space<vmem>>, %arg3: memref<32x96xbf16, #tpu.memory_space<vmem>>, %arg4: memref<1x96xf32, #tpu.memory_space<vmem>>, %arg5: memref<32x32xbf16, #tpu.memory_space<vmem>>, %arg6: memref<1x32xf32, #tpu.memory_space<vmem>>, %arg7: memref<1x32xf32, #tpu.memory_space<vmem>>, %arg8: memref<1x32xf32, #tpu.memory_space<vmem>>, %arg9: memref<32x64xbf16, #tpu.memory_space<vmem>>, %arg10: memref<1x64xf32, #tpu.memory_space<vmem>>, %arg11: memref<64x32xbf16, #tpu.memory_space<vmem>>, %arg12: memref<1x32xf32, #tpu.memory_space<vmem>>, %arg13: memref<1x32xf32, #tpu.memory_space<vmem>>, %arg14: memref<1x32xf32, #tpu.memory_space<vmem>>, %arg15: memref<8x32xf32, #tpu.memory_space<vmem>>) attributes {dimension_semantics = [#tpu.dimension_semantics<parallel>], iteration_bounds = array<i64: 2>, scalar_prefetch = 0 : i64, scratch_operands = 0 : i64, tpu.core_type = #tpu.core_type<tc>, window_params = [{transform_indices = @transform_0, window_bounds = array<i64: 8, 32>}, {transform_indices = @transform_1, window_bounds = array<i64: 1, 1, 8>}, {pipeline_mode = #tpu.pipeline_mode<synchronous>, transform_indices = @transform_2, window_bounds = array<i64: 32, 96>}, {pipeline_mode = #tpu.pipeline_mode<synchronous>, transform_indices = @transform_3, window_bounds = array<i64: 1, 96>}, {pipeline_mode = #tpu.pipeline_mode<synchronous>, transform_indices = @transform_4, window_bounds = array<i64: 32, 32>}, {pipeline_mode = #tpu.pipeline_mode<synchronous>, transform_indices = @transform_5, window_bounds = array<i64: 1, 32>}, {pipeline_mode = #tpu.pipeline_mode<synchronous>, transform_indices = @transform_6, window_bounds = array<i64: 1, 32>}, {pipeline_mode = #tpu.pipeline_mode<synchronous>, transform_indices = @transform_7, window_bounds = array<i64: 1, 32>}, {pipeline_mode = #tpu.pipeline_mode<synchronous>, transform_indices = @transform_8, window_bounds = array<i64: 32, 64>}, {pipeline_mode = #tpu.pipeline_mode<synchronous>, transform_indices = @transform_9, window_bounds = array<i64: 1, 64>}, {pipeline_mode = #tpu.pipeline_mode<synchronous>, transform_indices = @transform_10, window_bounds = array<i64: 64, 32>}, {pipeline_mode = #tpu.pipeline_mode<synchronous>, transform_indices = @transform_11, window_bounds = array<i64: 1, 32>}, {pipeline_mode = #tpu.pipeline_mode<synchronous>, transform_indices = @transform_12, window_bounds = array<i64: 1, 32>}, {pipeline_mode = #tpu.pipeline_mode<synchronous>, transform_indices = @transform_13, window_bounds = array<i64: 1, 32>}, {transform_indices = @transform_14, window_bounds = array<i64: 8, 32>}]} {
    %c0 = arith.constant 0 : index
    %c0_0 = arith.constant 0 : index
    %0 = vector.load %arg1[%c0, %c0_0] : memref<8x32xf32, #tpu.memory_space<vmem>>, vector<8x32xf32>
    %c0_1 = arith.constant 0 : index
    %c0_2 = arith.constant 0 : index
    %c0_3 = arith.constant 0 : index
    %1 = vector.load %arg2[%c0_1, %c0_2, %c0_3] : memref<1x1x8xf32, #tpu.memory_space<vmem>>, vector<1x1x8xf32>
    %2 = vector.shape_cast %1 : vector<1x1x8xf32> to vector<1x8xf32>
    %3 = arith.truncf %0 : vector<8x32xf32> to vector<8x32xbf16>
    %c0_4 = arith.constant 0 : index
    %c0_5 = arith.constant 0 : index
    %4 = vector.load %arg3[%c0_4, %c0_5] : memref<32x96xbf16, #tpu.memory_space<vmem>>, vector<32x96xbf16>
    %cst = arith.constant dense<0.000000e+00> : vector<8x96xf32>
    %5 = tpu.matmul %3, %4, %cst {dimension_numbers = #tpu.dot_dimension_numbers<[1], [0], [0], [1], [0, 0, 1, 1], [], []>} : vector<8x32xbf16>, vector<32x96xbf16>, vector<8x96xf32> -> vector<8x96xf32>
    %c0_6 = arith.constant 0 : index
    %c0_7 = arith.constant 0 : index
    %6 = vector.load %arg4[%c0_6, %c0_7] : memref<1x96xf32, #tpu.memory_space<vmem>>, vector<1x96xf32>
    %7 = vector.broadcast %6 : vector<1x96xf32> to vector<8x96xf32>
    %8 = arith.addf %5, %7 : vector<8x96xf32>
    %9 = vector.extract_strided_slice %8 {offsets = [0, 0], sizes = [8, 32], strides = [1, 1]} : vector<8x96xf32> to vector<8x32xf32>
    %10 = vector.extract_strided_slice %8 {offsets = [0, 32], sizes = [8, 32], strides = [1, 1]} : vector<8x96xf32> to vector<8x32xf32>
    %11 = vector.extract_strided_slice %8 {offsets = [0, 64], sizes = [8, 32], strides = [1, 1]} : vector<8x96xf32> to vector<8x32xf32>
    %12 = vector.extract_strided_slice %9 {offsets = [0, 0], sizes = [8, 8], strides = [1, 1]} : vector<8x32xf32> to vector<8x8xf32>
    %13 = arith.truncf %12 : vector<8x8xf32> to vector<8x8xbf16>
    %14 = vector.extract_strided_slice %10 {offsets = [0, 0], sizes = [8, 8], strides = [1, 1]} : vector<8x32xf32> to vector<8x8xf32>
    %15 = arith.truncf %14 : vector<8x8xf32> to vector<8x8xbf16>
    %16 = vector.extract_strided_slice %11 {offsets = [0, 0], sizes = [8, 8], strides = [1, 1]} : vector<8x32xf32> to vector<8x8xf32>
    %17 = arith.truncf %16 : vector<8x8xf32> to vector<8x8xbf16>
    %cst_8 = arith.constant dense<0.000000e+00> : vector<8x8xf32>
    %18 = tpu.matmul %13, %15, %cst_8 {dimension_numbers = #tpu.dot_dimension_numbers<[1], [1], [0], [0], [0, 0, 1, 0], [], []>} : vector<8x8xbf16>, vector<8x8xbf16>, vector<8x8xf32> -> vector<8x8xf32>
    %cst_9 = arith.constant 0.353553385 : f32
    %19 = vector.broadcast %cst_9 : f32 to vector<8x8xf32>
    %20 = arith.mulf %18, %19 : vector<8x8xf32>
    %21 = vector.broadcast %2 : vector<1x8xf32> to vector<8x8xf32>
    %22 = arith.addf %20, %21 : vector<8x8xf32>
    %cst_10 = arith.constant dense<0xFF800000> : vector<8xf32>
    %23 = vector.multi_reduction <maximumf>, %22, %cst_10 [1] : vector<8x8xf32> to vector<8xf32>
    %24 = vector.shape_cast %23 : vector<8xf32> to vector<8x1xf32>
    %25 = vector.broadcast %24 : vector<8x1xf32> to vector<8x8xf32>
    %26 = arith.subf %22, %25 : vector<8x8xf32>
    %27 = math.exp %26 : vector<8x8xf32>
    %cst_11 = arith.constant dense<0.000000e+00> : vector<8xf32>
    %28 = vector.multi_reduction <add>, %27, %cst_11 [1] : vector<8x8xf32> to vector<8xf32>
    %29 = vector.shape_cast %28 : vector<8xf32> to vector<8x1xf32>
    %30 = arith.truncf %27 : vector<8x8xf32> to vector<8x8xbf16>
    %cst_12 = arith.constant dense<0.000000e+00> : vector<8x8xf32>
    %31 = tpu.matmul %30, %17, %cst_12 {dimension_numbers = #tpu.dot_dimension_numbers<[1], [0], [0], [1], [0, 0, 1, 1], [], []>} : vector<8x8xbf16>, vector<8x8xbf16>, vector<8x8xf32> -> vector<8x8xf32>
    %32 = tpu.reciprocal %29 {approx = true} : vector<8x1xf32> -> vector<8x1xf32>
    %33 = vector.broadcast %32 : vector<8x1xf32> to vector<8x8xf32>
    %34 = arith.mulf %31, %33 : vector<8x8xf32>
    %35 = vector.extract_strided_slice %9 {offsets = [0, 8], sizes = [8, 8], strides = [1, 1]} : vector<8x32xf32> to vector<8x8xf32>
    %36 = arith.truncf %35 : vector<8x8xf32> to vector<8x8xbf16>
    %37 = vector.extract_strided_slice %10 {offsets = [0, 8], sizes = [8, 8], strides = [1, 1]} : vector<8x32xf32> to vector<8x8xf32>
    %38 = arith.truncf %37 : vector<8x8xf32> to vector<8x8xbf16>
    %39 = vector.extract_strided_slice %11 {offsets = [0, 8], sizes = [8, 8], strides = [1, 1]} : vector<8x32xf32> to vector<8x8xf32>
    %40 = arith.truncf %39 : vector<8x8xf32> to vector<8x8xbf16>
    %cst_13 = arith.constant dense<0.000000e+00> : vector<8x8xf32>
    %41 = tpu.matmul %36, %38, %cst_13 {dimension_numbers = #tpu.dot_dimension_numbers<[1], [1], [0], [0], [0, 0, 1, 0], [], []>} : vector<8x8xbf16>, vector<8x8xbf16>, vector<8x8xf32> -> vector<8x8xf32>
    %cst_14 = arith.constant 0.353553385 : f32
    %42 = vector.broadcast %cst_14 : f32 to vector<8x8xf32>
    %43 = arith.mulf %41, %42 : vector<8x8xf32>
    %44 = vector.broadcast %2 : vector<1x8xf32> to vector<8x8xf32>
    %45 = arith.addf %43, %44 : vector<8x8xf32>
    %cst_15 = arith.constant dense<0xFF800000> : vector<8xf32>
    %46 = vector.multi_reduction <maximumf>, %45, %cst_15 [1] : vector<8x8xf32> to vector<8xf32>
    %47 = vector.shape_cast %46 : vector<8xf32> to vector<8x1xf32>
    %48 = vector.broadcast %47 : vector<8x1xf32> to vector<8x8xf32>
    %49 = arith.subf %45, %48 : vector<8x8xf32>
    %50 = math.exp %49 : vector<8x8xf32>
    %cst_16 = arith.constant dense<0.000000e+00> : vector<8xf32>
    %51 = vector.multi_reduction <add>, %50, %cst_16 [1] : vector<8x8xf32> to vector<8xf32>
    %52 = vector.shape_cast %51 : vector<8xf32> to vector<8x1xf32>
    %53 = arith.truncf %50 : vector<8x8xf32> to vector<8x8xbf16>
    %cst_17 = arith.constant dense<0.000000e+00> : vector<8x8xf32>
    %54 = tpu.matmul %53, %40, %cst_17 {dimension_numbers = #tpu.dot_dimension_numbers<[1], [0], [0], [1], [0, 0, 1, 1], [], []>} : vector<8x8xbf16>, vector<8x8xbf16>, vector<8x8xf32> -> vector<8x8xf32>
    %55 = tpu.reciprocal %52 {approx = true} : vector<8x1xf32> -> vector<8x1xf32>
    %56 = vector.broadcast %55 : vector<8x1xf32> to vector<8x8xf32>
    %57 = arith.mulf %54, %56 : vector<8x8xf32>
    %58 = vector.extract_strided_slice %9 {offsets = [0, 16], sizes = [8, 8], strides = [1, 1]} : vector<8x32xf32> to vector<8x8xf32>
    %59 = arith.truncf %58 : vector<8x8xf32> to vector<8x8xbf16>
    %60 = vector.extract_strided_slice %10 {offsets = [0, 16], sizes = [8, 8], strides = [1, 1]} : vector<8x32xf32> to vector<8x8xf32>
    %61 = arith.truncf %60 : vector<8x8xf32> to vector<8x8xbf16>
    %62 = vector.extract_strided_slice %11 {offsets = [0, 16], sizes = [8, 8], strides = [1, 1]} : vector<8x32xf32> to vector<8x8xf32>
    %63 = arith.truncf %62 : vector<8x8xf32> to vector<8x8xbf16>
    %cst_18 = arith.constant dense<0.000000e+00> : vector<8x8xf32>
    %64 = tpu.matmul %59, %61, %cst_18 {dimension_numbers = #tpu.dot_dimension_numbers<[1], [1], [0], [0], [0, 0, 1, 0], [], []>} : vector<8x8xbf16>, vector<8x8xbf16>, vector<8x8xf32> -> vector<8x8xf32>
    %cst_19 = arith.constant 0.353553385 : f32
    %65 = vector.broadcast %cst_19 : f32 to vector<8x8xf32>
    %66 = arith.mulf %64, %65 : vector<8x8xf32>
    %67 = vector.broadcast %2 : vector<1x8xf32> to vector<8x8xf32>
    %68 = arith.addf %66, %67 : vector<8x8xf32>
    %cst_20 = arith.constant dense<0xFF800000> : vector<8xf32>
    %69 = vector.multi_reduction <maximumf>, %68, %cst_20 [1] : vector<8x8xf32> to vector<8xf32>
    %70 = vector.shape_cast %69 : vector<8xf32> to vector<8x1xf32>
    %71 = vector.broadcast %70 : vector<8x1xf32> to vector<8x8xf32>
    %72 = arith.subf %68, %71 : vector<8x8xf32>
    %73 = math.exp %72 : vector<8x8xf32>
    %cst_21 = arith.constant dense<0.000000e+00> : vector<8xf32>
    %74 = vector.multi_reduction <add>, %73, %cst_21 [1] : vector<8x8xf32> to vector<8xf32>
    %75 = vector.shape_cast %74 : vector<8xf32> to vector<8x1xf32>
    %76 = arith.truncf %73 : vector<8x8xf32> to vector<8x8xbf16>
    %cst_22 = arith.constant dense<0.000000e+00> : vector<8x8xf32>
    %77 = tpu.matmul %76, %63, %cst_22 {dimension_numbers = #tpu.dot_dimension_numbers<[1], [0], [0], [1], [0, 0, 1, 1], [], []>} : vector<8x8xbf16>, vector<8x8xbf16>, vector<8x8xf32> -> vector<8x8xf32>
    %78 = tpu.reciprocal %75 {approx = true} : vector<8x1xf32> -> vector<8x1xf32>
    %79 = vector.broadcast %78 : vector<8x1xf32> to vector<8x8xf32>
    %80 = arith.mulf %77, %79 : vector<8x8xf32>
    %81 = vector.extract_strided_slice %9 {offsets = [0, 24], sizes = [8, 8], strides = [1, 1]} : vector<8x32xf32> to vector<8x8xf32>
    %82 = arith.truncf %81 : vector<8x8xf32> to vector<8x8xbf16>
    %83 = vector.extract_strided_slice %10 {offsets = [0, 24], sizes = [8, 8], strides = [1, 1]} : vector<8x32xf32> to vector<8x8xf32>
    %84 = arith.truncf %83 : vector<8x8xf32> to vector<8x8xbf16>
    %85 = vector.extract_strided_slice %11 {offsets = [0, 24], sizes = [8, 8], strides = [1, 1]} : vector<8x32xf32> to vector<8x8xf32>
    %86 = arith.truncf %85 : vector<8x8xf32> to vector<8x8xbf16>
    %cst_23 = arith.constant dense<0.000000e+00> : vector<8x8xf32>
    %87 = tpu.matmul %82, %84, %cst_23 {dimension_numbers = #tpu.dot_dimension_numbers<[1], [1], [0], [0], [0, 0, 1, 0], [], []>} : vector<8x8xbf16>, vector<8x8xbf16>, vector<8x8xf32> -> vector<8x8xf32>
    %cst_24 = arith.constant 0.353553385 : f32
    %88 = vector.broadcast %cst_24 : f32 to vector<8x8xf32>
    %89 = arith.mulf %87, %88 : vector<8x8xf32>
    %90 = vector.broadcast %2 : vector<1x8xf32> to vector<8x8xf32>
    %91 = arith.addf %89, %90 : vector<8x8xf32>
    %cst_25 = arith.constant dense<0xFF800000> : vector<8xf32>
    %92 = vector.multi_reduction <maximumf>, %91, %cst_25 [1] : vector<8x8xf32> to vector<8xf32>
    %93 = vector.shape_cast %92 : vector<8xf32> to vector<8x1xf32>
    %94 = vector.broadcast %93 : vector<8x1xf32> to vector<8x8xf32>
    %95 = arith.subf %91, %94 : vector<8x8xf32>
    %96 = math.exp %95 : vector<8x8xf32>
    %cst_26 = arith.constant dense<0.000000e+00> : vector<8xf32>
    %97 = vector.multi_reduction <add>, %96, %cst_26 [1] : vector<8x8xf32> to vector<8xf32>
    %98 = vector.shape_cast %97 : vector<8xf32> to vector<8x1xf32>
    %99 = arith.truncf %96 : vector<8x8xf32> to vector<8x8xbf16>
    %cst_27 = arith.constant dense<0.000000e+00> : vector<8x8xf32>
    %100 = tpu.matmul %99, %86, %cst_27 {dimension_numbers = #tpu.dot_dimension_numbers<[1], [0], [0], [1], [0, 0, 1, 1], [], []>} : vector<8x8xbf16>, vector<8x8xbf16>, vector<8x8xf32> -> vector<8x8xf32>
    %101 = tpu.reciprocal %98 {approx = true} : vector<8x1xf32> -> vector<8x1xf32>
    %102 = vector.broadcast %101 : vector<8x1xf32> to vector<8x8xf32>
    %103 = arith.mulf %100, %102 : vector<8x8xf32>
    %104 = tpu.concatenate %34, %57, %80, %103 in 1 : vector<8x8xf32>, vector<8x8xf32>, vector<8x8xf32>, vector<8x8xf32> -> vector<8x32xf32>
    %105 = arith.truncf %104 : vector<8x32xf32> to vector<8x32xbf16>
    %c0_28 = arith.constant 0 : index
    %c0_29 = arith.constant 0 : index
    %106 = vector.load %arg5[%c0_28, %c0_29] : memref<32x32xbf16, #tpu.memory_space<vmem>>, vector<32x32xbf16>
    %cst_30 = arith.constant dense<0.000000e+00> : vector<8x32xf32>
    %107 = tpu.matmul %105, %106, %cst_30 {dimension_numbers = #tpu.dot_dimension_numbers<[1], [0], [0], [1], [0, 0, 1, 1], [], []>} : vector<8x32xbf16>, vector<32x32xbf16>, vector<8x32xf32> -> vector<8x32xf32>
    %c0_31 = arith.constant 0 : index
    %c0_32 = arith.constant 0 : index
    %108 = vector.load %arg6[%c0_31, %c0_32] : memref<1x32xf32, #tpu.memory_space<vmem>>, vector<1x32xf32>
    %109 = vector.broadcast %108 : vector<1x32xf32> to vector<8x32xf32>
    %110 = arith.addf %107, %109 : vector<8x32xf32>
    %111 = arith.addf %110, %0 : vector<8x32xf32>
    %c0_33 = arith.constant 0 : index
    %c0_34 = arith.constant 0 : index
    %112 = vector.load %arg7[%c0_33, %c0_34] : memref<1x32xf32, #tpu.memory_space<vmem>>, vector<1x32xf32>
    %c0_35 = arith.constant 0 : index
    %c0_36 = arith.constant 0 : index
    %113 = vector.load %arg8[%c0_35, %c0_36] : memref<1x32xf32, #tpu.memory_space<vmem>>, vector<1x32xf32>
    %cst_37 = arith.constant dense<0.000000e+00> : vector<8xf32>
    %114 = vector.multi_reduction <add>, %111, %cst_37 [1] : vector<8x32xf32> to vector<8xf32>
    %115 = vector.shape_cast %114 : vector<8xf32> to vector<8x1xf32>
    %cst_38 = arith.constant 3.200000e+01 : f32
    %116 = vector.broadcast %cst_38 : f32 to vector<8x1xf32>
    %117 = arith.divf %115, %116 : vector<8x1xf32>
    %118 = vector.broadcast %117 : vector<8x1xf32> to vector<8x32xf32>
    %119 = arith.subf %111, %118 : vector<8x32xf32>
    %120 = arith.mulf %119, %119 : vector<8x32xf32>
    %cst_39 = arith.constant dense<0.000000e+00> : vector<8xf32>
    %121 = vector.multi_reduction <add>, %120, %cst_39 [1] : vector<8x32xf32> to vector<8xf32>
    %122 = vector.shape_cast %121 : vector<8xf32> to vector<8x1xf32>
    %cst_40 = arith.constant 3.200000e+01 : f32
    %123 = vector.broadcast %cst_40 : f32 to vector<8x1xf32>
    %124 = arith.divf %122, %123 : vector<8x1xf32>
    %cst_41 = arith.constant 9.99999996E-13 : f32
    %125 = vector.broadcast %cst_41 : f32 to vector<8x1xf32>
    %126 = arith.addf %124, %125 : vector<8x1xf32>
    %127 = math.rsqrt %126 : vector<8x1xf32>
    %128 = vector.broadcast %127 : vector<8x1xf32> to vector<8x32xf32>
    %129 = arith.mulf %119, %128 : vector<8x32xf32>
    %130 = vector.broadcast %112 : vector<1x32xf32> to vector<8x32xf32>
    %131 = arith.mulf %129, %130 : vector<8x32xf32>
    %132 = vector.broadcast %113 : vector<1x32xf32> to vector<8x32xf32>
    %133 = arith.addf %131, %132 : vector<8x32xf32>
    %134 = arith.truncf %133 : vector<8x32xf32> to vector<8x32xbf16>
    %c0_42 = arith.constant 0 : index
    %c0_43 = arith.constant 0 : index
    %135 = vector.load %arg9[%c0_42, %c0_43] : memref<32x64xbf16, #tpu.memory_space<vmem>>, vector<32x64xbf16>
    %cst_44 = arith.constant dense<0.000000e+00> : vector<8x64xf32>
    %136 = tpu.matmul %134, %135, %cst_44 {dimension_numbers = #tpu.dot_dimension_numbers<[1], [0], [0], [1], [0, 0, 1, 1], [], []>} : vector<8x32xbf16>, vector<32x64xbf16>, vector<8x64xf32> -> vector<8x64xf32>
    %c0_45 = arith.constant 0 : index
    %c0_46 = arith.constant 0 : index
    %137 = vector.load %arg10[%c0_45, %c0_46] : memref<1x64xf32, #tpu.memory_space<vmem>>, vector<1x64xf32>
    %138 = vector.broadcast %137 : vector<1x64xf32> to vector<8x64xf32>
    %139 = arith.addf %136, %138 : vector<8x64xf32>
    %140 = arith.mulf %139, %139 : vector<8x64xf32>
    %141 = arith.mulf %139, %140 : vector<8x64xf32>
    %cst_47 = arith.constant 4.471500e-02 : f32
    %142 = vector.broadcast %cst_47 : f32 to vector<8x64xf32>
    %143 = arith.mulf %142, %141 : vector<8x64xf32>
    %144 = arith.addf %139, %143 : vector<8x64xf32>
    %cst_48 = arith.constant 0.797884583 : f32
    %145 = vector.broadcast %cst_48 : f32 to vector<8x64xf32>
    %146 = arith.mulf %145, %144 : vector<8x64xf32>
    %147 = math.tanh %146 : vector<8x64xf32>
    %cst_49 = arith.constant 1.000000e+00 : f32
    %148 = vector.broadcast %cst_49 : f32 to vector<8x64xf32>
    %149 = arith.addf %148, %147 : vector<8x64xf32>
    %cst_50 = arith.constant 5.000000e-01 : f32
    %150 = vector.broadcast %cst_50 : f32 to vector<8x64xf32>
    %151 = arith.mulf %150, %149 : vector<8x64xf32>
    %152 = arith.mulf %139, %151 : vector<8x64xf32>
    %153 = arith.truncf %152 : vector<8x64xf32> to vector<8x64xbf16>
    %c0_51 = arith.constant 0 : index
    %c0_52 = arith.constant 0 : index
    %154 = vector.load %arg11[%c0_51, %c0_52] : memref<64x32xbf16, #tpu.memory_space<vmem>>, vector<64x32xbf16>
    %cst_53 = arith.constant dense<0.000000e+00> : vector<8x32xf32>
    %155 = tpu.matmul %153, %154, %cst_53 {dimension_numbers = #tpu.dot_dimension_numbers<[1], [0], [0], [1], [0, 0, 1, 1], [], []>} : vector<8x64xbf16>, vector<64x32xbf16>, vector<8x32xf32> -> vector<8x32xf32>
    %c0_54 = arith.constant 0 : index
    %c0_55 = arith.constant 0 : index
    %156 = vector.load %arg12[%c0_54, %c0_55] : memref<1x32xf32, #tpu.memory_space<vmem>>, vector<1x32xf32>
    %157 = vector.broadcast %156 : vector<1x32xf32> to vector<8x32xf32>
    %158 = arith.addf %155, %157 : vector<8x32xf32>
    %159 = arith.addf %158, %133 : vector<8x32xf32>
    %c0_56 = arith.constant 0 : index
    %c0_57 = arith.constant 0 : index
    %160 = vector.load %arg13[%c0_56, %c0_57] : memref<1x32xf32, #tpu.memory_space<vmem>>, vector<1x32xf32>
    %c0_58 = arith.constant 0 : index
    %c0_59 = arith.constant 0 : index
    %161 = vector.load %arg14[%c0_58, %c0_59] : memref<1x32xf32, #tpu.memory_space<vmem>>, vector<1x32xf32>
    %cst_60 = arith.constant dense<0.000000e+00> : vector<8xf32>
    %162 = vector.multi_reduction <add>, %159, %cst_60 [1] : vector<8x32xf32> to vector<8xf32>
    %163 = vector.shape_cast %162 : vector<8xf32> to vector<8x1xf32>
    %cst_61 = arith.constant 3.200000e+01 : f32
    %164 = vector.broadcast %cst_61 : f32 to vector<8x1xf32>
    %165 = arith.divf %163, %164 : vector<8x1xf32>
    %166 = vector.broadcast %165 : vector<8x1xf32> to vector<8x32xf32>
    %167 = arith.subf %159, %166 : vector<8x32xf32>
    %168 = arith.mulf %167, %167 : vector<8x32xf32>
    %cst_62 = arith.constant dense<0.000000e+00> : vector<8xf32>
    %169 = vector.multi_reduction <add>, %168, %cst_62 [1] : vector<8x32xf32> to vector<8xf32>
    %170 = vector.shape_cast %169 : vector<8xf32> to vector<8x1xf32>
    %cst_63 = arith.constant 3.200000e+01 : f32
    %171 = vector.broadcast %cst_63 : f32 to vector<8x1xf32>
    %172 = arith.divf %170, %171 : vector<8x1xf32>
    %cst_64 = arith.constant 9.99999996E-13 : f32
    %173 = vector.broadcast %cst_64 : f32 to vector<8x1xf32>
    %174 = arith.addf %172, %173 : vector<8x1xf32>
    %175 = math.rsqrt %174 : vector<8x1xf32>
    %176 = vector.broadcast %175 : vector<8x1xf32> to vector<8x32xf32>
    %177 = arith.mulf %167, %176 : vector<8x32xf32>
    %178 = vector.broadcast %160 : vector<1x32xf32> to vector<8x32xf32>
    %179 = arith.mulf %177, %178 : vector<8x32xf32>
    %180 = vector.broadcast %161 : vector<1x32xf32> to vector<8x32xf32>
    %181 = arith.addf %179, %180 : vector<8x32xf32>
    %c0_65 = arith.constant 0 : index
    %c0_66 = arith.constant 0 : index
    %182 = vector.load %arg15[%c0_65, %c0_66] : memref<8x32xf32, #tpu.memory_space<vmem>>, vector<8x32xf32>
    tpu.vector_store %arg15[%c0_65, %c0_66], %181 {strides = array<i32>} : memref<8x32xf32, #tpu.memory_space<vmem>>, vector<8x32xf32>,
    return
  }
  func.func @transform_0(%arg0: i32) -> (i32, i32) {
    %c0_i32 = arith.constant 0 : i32
    %c0_i32_0 = arith.constant 0 : i32
    return %arg0, %c0_i32 : i32, i32
  }
  func.func @transform_1(%arg0: i32) -> (i32, i32, i32) {
    %c0_i32 = arith.constant 0 : i32
    %c0_i32_0 = arith.constant 0 : i32
    %c0_i32_1 = arith.constant 0 : i32
    return %arg0, %c0_i32, %c0_i32_0 : i32, i32, i32
  }
  func.func @transform_2(%arg0: i32) -> (i32, i32) {
    %c0_i32 = arith.constant 0 : i32
    %c0_i32_0 = arith.constant 0 : i32
    %c0_i32_1 = arith.constant 0 : i32
    return %c0_i32, %c0_i32_0 : i32, i32
  }
  func.func @transform_3(%arg0: i32) -> (i32, i32) {
    %c0_i32 = arith.constant 0 : i32
    %c0_i32_0 = arith.constant 0 : i32
    %c0_i32_1 = arith.constant 0 : i32
    return %c0_i32, %c0_i32_0 : i32, i32
  }
  func.func @transform_4(%arg0: i32) -> (i32, i32) {
    %c0_i32 = arith.constant 0 : i32
    %c0_i32_0 = arith.constant 0 : i32
    %c0_i32_1 = arith.constant 0 : i32
    return %c0_i32, %c0_i32_0 : i32, i32
  }
  func.func @transform_5(%arg0: i32) -> (i32, i32) {
    %c0_i32 = arith.constant 0 : i32
    %c0_i32_0 = arith.constant 0 : i32
    %c0_i32_1 = arith.constant 0 : i32
    return %c0_i32, %c0_i32_0 : i32, i32
  }
  func.func @transform_6(%arg0: i32) -> (i32, i32) {
    %c0_i32 = arith.constant 0 : i32
    %c0_i32_0 = arith.constant 0 : i32
    %c0_i32_1 = arith.constant 0 : i32
    return %c0_i32, %c0_i32_0 : i32, i32
  }
  func.func @transform_7(%arg0: i32) -> (i32, i32) {
    %c0_i32 = arith.constant 0 : i32
    %c0_i32_0 = arith.constant 0 : i32
    %c0_i32_1 = arith.constant 0 : i32
    return %c0_i32, %c0_i32_0 : i32, i32
  }
  func.func @transform_8(%arg0: i32) -> (i32, i32) {
    %c0_i32 = arith.constant 0 : i32
    %c0_i32_0 = arith.constant 0 : i32
    %c0_i32_1 = arith.constant 0 : i32
    return %c0_i32, %c0_i32_0 : i32, i32
  }
  func.func @transform_9(%arg0: i32) -> (i32, i32) {
    %c0_i32 = arith.constant 0 : i32
    %c0_i32_0 = arith.constant 0 : i32
    %c0_i32_1 = arith.constant 0 : i32
    return %c0_i32, %c0_i32_0 : i32, i32
  }
  func.func @transform_10(%arg0: i32) -> (i32, i32) {
    %c0_i32 = arith.constant 0 : i32
    %c0_i32_0 = arith.constant 0 : i32
    %c0_i32_1 = arith.constant 0 : i32
    return %c0_i32, %c0_i32_0 : i32, i32
  }
  func.func @transform_11(%arg0: i32) -> (i32, i32) {
    %c0_i32 = arith.constant 0 : i32
    %c0_i32_0 = arith.constant 0 : i32
    %c0_i32_1 = arith.constant 0 : i32
    return %c0_i32, %c0_i32_0 : i32, i32
  }
  func.func @transform_12(%arg0: i32) -> (i32, i32) {
    %c0_i32 = arith.constant 0 : i32
    %c0_i32_0 = arith.constant 0 : i32
    %c0_i32_1 = arith.constant 0 : i32
    return %c0_i32, %c0_i32_0 : i32, i32
  }
  func.func @transform_13(%arg0: i32) -> (i32, i32) {
    %c0_i32 = arith.constant 0 : i32
    %c0_i32_0 = arith.constant 0 : i32
    %c0_i32_1 = arith.constant 0 : i32
    return %c0_i32, %c0_i32_0 : i32, i32
  }
  func.func @transform_14(%arg0: i32) -> (i32, i32) {
    %c0_i32 = arith.constant 0 : i32
    %c0_i32_0 = arith.constant 0 : i32
    return %arg0, %c0_i32 : i32, i32
  }
}

module attributes {stable_mosaic.version = 11 : i64} {
  func.func @_classifier_kernel(%arg0: memref<2x32xf32, #tpu.memory_space<vmem>>, %arg1: memref<32x16xbf16, #tpu.memory_space<vmem>>, %arg2: memref<1x16xf32, #tpu.memory_space<vmem>>, %arg3: memref<16x128xbf16, #tpu.memory_space<vmem>>, %arg4: memref<1x128xf32, #tpu.memory_space<vmem>>, %arg5: memref<2x128xf32, #tpu.memory_space<vmem>>) attributes {dimension_semantics = [], scalar_prefetch = 0 : i64, scratch_operands = 0 : i64, tpu.core_type = #tpu.core_type<tc>} {
    %c0 = arith.constant 0 : index
    %c0_0 = arith.constant 0 : index
    %0 = vector.load %arg0[%c0, %c0_0] : memref<2x32xf32, #tpu.memory_space<vmem>>, vector<2x32xf32>
    %1 = arith.truncf %0 : vector<2x32xf32> to vector<2x32xbf16>
    %c0_1 = arith.constant 0 : index
    %c0_2 = arith.constant 0 : index
    %2 = vector.load %arg1[%c0_1, %c0_2] : memref<32x16xbf16, #tpu.memory_space<vmem>>, vector<32x16xbf16>
    %cst = arith.constant dense<0.000000e+00> : vector<2x16xf32>
    %3 = tpu.matmul %1, %2, %cst {dimension_numbers = #tpu.dot_dimension_numbers<[1], [0], [0], [1], [0, 0, 1, 1], [], []>} : vector<2x32xbf16>, vector<32x16xbf16>, vector<2x16xf32> -> vector<2x16xf32>
    %c0_3 = arith.constant 0 : index
    %c0_4 = arith.constant 0 : index
    %4 = vector.load %arg2[%c0_3, %c0_4] : memref<1x16xf32, #tpu.memory_space<vmem>>, vector<1x16xf32>
    %5 = vector.broadcast %4 : vector<1x16xf32> to vector<2x16xf32>
    %6 = arith.addf %3, %5 : vector<2x16xf32>
    %cst_5 = arith.constant 0.000000e+00 : f32
    %7 = vector.broadcast %cst_5 : f32 to vector<2x16xf32>
    %8 = arith.maximumf %6, %7 : vector<2x16xf32>
    %9 = arith.truncf %8 : vector<2x16xf32> to vector<2x16xbf16>
    %c0_6 = arith.constant 0 : index
    %c0_7 = arith.constant 0 : index
    %10 = vector.load %arg3[%c0_6, %c0_7] : memref<16x128xbf16, #tpu.memory_space<vmem>>, vector<16x128xbf16>
    %cst_8 = arith.constant dense<0.000000e+00> : vector<2x128xf32>
    %11 = tpu.matmul %9, %10, %cst_8 {dimension_numbers = #tpu.dot_dimension_numbers<[1], [0], [0], [1], [0, 0, 1, 1], [], []>} : vector<2x16xbf16>, vector<16x128xbf16>, vector<2x128xf32> -> vector<2x128xf32>
    %c0_9 = arith.constant 0 : index
    %c0_10 = arith.constant 0 : index
    %12 = vector.load %arg4[%c0_9, %c0_10] : memref<1x128xf32, #tpu.memory_space<vmem>>, vector<1x128xf32>
    %13 = vector.broadcast %12 : vector<1x128xf32> to vector<2x128xf32>
    %14 = arith.addf %11, %13 : vector<2x128xf32>
    %cst_11 = arith.constant dense<0xFF800000> : vector<2xf32>
    %15 = vector.multi_reduction <maximumf>, %14, %cst_11 [1] : vector<2x128xf32> to vector<2xf32>
    %16 = vector.shape_cast %15 : vector<2xf32> to vector<2x1xf32>
    %17 = vector.broadcast %16 : vector<2x1xf32> to vector<2x128xf32>
    %18 = arith.subf %14, %17 : vector<2x128xf32>
    %19 = math.exp %18 : vector<2x128xf32>
    %cst_12 = arith.constant dense<0.000000e+00> : vector<2xf32>
    %20 = vector.multi_reduction <add>, %19, %cst_12 [1] : vector<2x128xf32> to vector<2xf32>
    %21 = vector.shape_cast %20 : vector<2xf32> to vector<2x1xf32>
    %22 = tpu.reciprocal %21 {approx = true} : vector<2x1xf32> -> vector<2x1xf32>
    %23 = vector.broadcast %22 : vector<2x1xf32> to vector<2x128xf32>
    %24 = arith.mulf %19, %23 : vector<2x128xf32>
    %c0_13 = arith.constant 0 : index
    %c0_14 = arith.constant 0 : index
    %25 = vector.load %arg5[%c0_13, %c0_14] : memref<2x128xf32, #tpu.memory_space<vmem>>, vector<2x128xf32>
    tpu.vector_store %arg5[%c0_13, %c0_14], %24 {strides = array<i32>} : memref<2x128xf32, #tpu.memory_space<vmem>>, vector<2x128xf32>,
    return
  }
}

</mosaic_0001>

<bundles_post_ra>
// kernel: bert_classifier_forward.4
= control target key start
LH: loop header
LB: loop body
LE: loop exit
PB: predicated region body
PF: predicated region fallthrough
CT: control target
= control target key end

     0   :  { %vm18_vm0 = vcmask 261120   ;;  %s118_s0 = inlined_call_operand.vmem [shape: f32[16,32], index: 0, kind: input, shape index: {}]   ;;  %s119_s1 = inlined_call_operand.vmem [shape: f32[1,32], index: 1, kind: input, shape index: {}]   ;;  %s120_s2 = inlined_call_operand.vmem [shape: f32[1,32], index: 2, kind: input, shape index: {}]   ;;  %s121_s3 = inlined_call_operand.vmem [shape: f32[16,32], index: 3, kind: output, shape index: {}]  }
   0x1   :  { %v14_v0 = vld [vmem:[%s118_s0] sm:$0xff]  ;;  %v15_v1 = vld [vmem:[%s118_s0 + $0x8] sm:$0xff] }
   0x2   :  { %v19_v2 = vsel %vm18_vm0, %v14_v0, 0.0  ;;  %v22_v3 = vsel %vm18_vm0, %v15_v1, 0.0  ;;  %v68_v21 = vld [vmem:[%s119_s1] ss:$0 sm:$0xff] }
   0x3   :  { %20 = vadd.xlane.f32.xlu0 %v19_v2  ;;  %v69_v23 = vld [vmem:[%s120_s2] ss:$0 sm:$0xff] }
   0x7   :  { %23 = vadd.xlane.f32.xlu0 %v22_v3 }
  0x90   :  { %v21_v4 = vpop.xlane.xlu0 %20 }
  0x91   :  { %v26_v5 = vmul.f32 0.03125, %v21_v4 }
  0x93   :  { %v28_v6 = vsub.f32 %v14_v0, %v26_v5 }
  0x94   :  { %v24_v7 = vpop.xlane.xlu0 %23 }
  0x95   :  { %v27_v8 = vmul.f32 0.03125, %v24_v7  ;;  %v30_v9 = vmul.f32 %v28_v6, %v28_v6 }
  0x97   :  { %v29_v10 = vsub.f32 %v15_v1, %v27_v8  ;;  %v32_v11 = vsel %vm18_vm0, %v30_v9, 0.0 }
  0x98   :  { %33 = vadd.xlane.f32.xlu1 %v32_v11 }
  0x99   :  { %v31_v12 = vmul.f32 %v29_v10, %v29_v10 }
  0x9b   :  { %v35_v13 = vsel %vm18_vm0, %v31_v12, 0.0 }
  0x9c   :  { %36 = vadd.xlane.f32.xlu1 %v35_v13 }
 0x125   :  { %v34_v14 = vpop.xlane.xlu1 %33 }
 0x126   :  { %v38_v15 = vmul.f32 0.03125, %v34_v14 }
 0x128   :  { %v40_v16 = vadd.f32 1e-12, %v38_v15 }
 0x129   :  { %v37_v17 = vpop.xlane.xlu1 %36 }
 0x12a   :  { %70 = vrsqrt.f32 %v40_v16  ;;  %v39_v18 = vmul.f32 0.03125, %v37_v17 }
 0x12c   :  { %v41_v19 = vadd.f32 1e-12, %v39_v18 }
 0x12e   :  { %72 = vrsqrt.f32 %v41_v19 }
 0x134   :  { %v71_v20 = vpop.eup %70 }
 0x135   :  { %v44_v22 = vmul.f32 %v71_v20, %v28_v6 }
 0x137   :  { %v52_v24 = vmul.f32 %v68_v21, %v44_v22 }
 0x138   :  { %v73_v25 = vpop.eup %72 }
 0x139   :  { %v60_v26 = vadd.f32 %v69_v23, %v52_v24  ;;  %v45_v27 = vmul.f32 %v73_v25, %v29_v10 }
 0x13b   :  { %62 = vst.msk [vmem:[%s121_s3] sm:$0xff] %vm18_vm0, %v60_v26  ;;  %v53_v28 = vmul.f32 %v68_v21, %v45_v27 }
 0x13d   :  { %v61_v29 = vadd.f32 %v69_v23, %v53_v28 }
 0x13f   :  { %63 = vst.msk [vmem:[%s121_s3 + $0x8] sm:$0xff] %vm18_vm0, %v61_v29 }

// kernel: bert_classifier_forward.7
= control target key start
LH: loop header
LB: loop body
LE: loop exit
PB: predicated region body
PF: predicated region fallthrough
CT: control target
= control target key end

     0   :  { %v239_v1 = vmov 0.0   ;;  %vm240_vm0 = vmmov 0   ;;  %s302_s0 = inlined_call_operand.vmem [shape: f32[2,32], index: 0, kind: input, shape index: {}]   ;;  %s303_s1 = inlined_call_operand.vmem [shape: bf16[32,16], index: 1, kind: input, shape index: {}]   ;;  %s304_s2 = inlined_call_operand.vmem [shape: f32[1,16], index: 2, kind: input, shape index: {}]   ;;  %s305_s3 = inlined_call_operand.vmem [shape: bf16[16,128], index: 3, kind: input, shape index: {}]   ;;  %s306_s4 = inlined_call_operand.vmem [shape: f32[1,128], index: 4, kind: input, shape index: {}]   ;;  %s307_s5 = inlined_call_operand.hbm [shape: f32[2,128], index: 5, kind: output, shape index: {}]  }
   0x1   :  { %v208_v0 = vld [vmem:[%s303_s1] sm:$0xff]   ;;  %191 = vmatprep.subr.bf16.mxu0 %v239_v1  ;;  %199 = vmatprep.subr.bf16.mxu1 %v239_v1  ;;  %v209_v2 = vld [vmem:[%s303_s1 + $0x8] sm:$0xff]  }
   0x2   :  { %192 = vmatpush3.bf16.msra.mxu0 %v208_v0  ;;  %195 = vmatprep.mubr.msk.bf16.mxu0 %vm240_vm0, %v239_v1  ;;  %v22_v3 = vld [vmem:[%s302_s0] sm:$0x3] }
   0x3   :  { %193 = vmatprep.subr.bf16.mxu0 %v239_v1  ;;  %201 = vmatprep.mubr.msk.bf16.mxu1 %vm240_vm0, %v239_v1 }
   0x4   :  { %10 = vsyncpa [#allocation3], 0  ;;  %v23_v4 = vpack.c.bf16 %v22_v3, %v22_v3  ;;  %vm47_vm1 = vcmask 261120   ;;  %v210_v5 = vld [vmem:[%s305_s3] sm:$0xff]   ;;  %vm108_vm2 = vcmask 130048   ;;  %vm152_vm3 = vcmask 1041408  }
   0x5   :  { %200 = vmatpush3.bf16.msra.mxu1 %v210_v5  ;;  %v179_v6 = vld [vmem:[%s304_s2] ss:$0 sm:$0xff]  ;;  %s241_s2 = smov [#allocation2]  }
   0x6   :  { %194 = vmatpush3.bf16.msra.mxu0 %v209_v2  ;;  %v183_v14 = vld [vmem:[%s306_s4] ss:$0 sm:$0xff]  ;;  %s171_s3 = sshll.u32 %s241_s2, 4  ;;  %s172_s3 = int_to_ptr.vmem [resolvable:$true] %s171_s3 }
   0x7   :  { %s215_s4 = scalar_lea.vmem %s172_s3, 32  ;;  %p220_p1 = scmp.lt.s32.totalorder %s172_s3, %s172_s3 }
   0x8   :  { %p216_p0 = scmp.ne.s32.totalorder %s172_s3, %s215_s4  ;;  %p221_p2 = scmp.lt.s32.totalorder %s215_s4, %s215_s4 }
   0x9   :  { %196 = vmatmul.mubr.msk.bf16.vlgmr.msra.gmra.mrb[0].mxu0 %vm47_vm1, %v23_v4 }
   0xa   :  { %p222_p3 = por %p221_p2, %p220_p1 }
   0xc   :  { %p223_p4 = pnand %p222_p3, %p216_p0 }
  0xdc   :  { %v85_v7 = vpop.f32.mrb[0].mxu0 }
  0xdd   :  { %v86_v8 = vadd.f32 %v179_v6, %v85_v7  ;;  %v197_v9 = vpop.f32.mrb[1].mxu0 }
  0xde   :  { %v88_v10 = vpop.f32.mrb[2].mxu0 }
  0xdf   :  { %v91_v11 = vmax.f32 %v86_v8, 0.0  ;;  %v198_v12 = vpop.f32.mrb[3].mxu0 }
  0xe1   :  { %v92_v13 = vpack.c.bf16 %v91_v11, %v91_v11 }
  0xe3   :  { %202 = vmatmul.mubr.msk.bf16.vlgmr.msra.gmra.mrb[0].mxu1 %vm108_vm2, %v92_v13 }
 0x1b6   :  { %v146_v15 = vpop.f32.mrb[0].mxu1 }
 0x1b7   :  { %v147_v16 = vadd.f32 %v183_v14, %v146_v15  ;;  %v203_v17 = vpop.f32.mrb[1].mxu1 }
 0x1b8   :  { %v149_v18 = vpop.f32.mrb[2].mxu1 }
 0x1b9   :  { %v204_v19 = vpop.f32.mrb[3].mxu1  ;;  %v153_v20 = vsel %vm152_vm3, %v147_v16, -inf }
 0x1ba   :  { %154 = vmax.xlane.f32.xlu0 %v153_v20 }
 0x247   :  { %v155_v21 = vpop.xlane.xlu0 %154 }
 0x248   :  { %v156_v22 = vsub.f32 %v147_v16, %v155_v21 }
 0x24a   :  { %v157_v23 = vmul.f32 1.442695, %v156_v22 }
 0x24c   :  { %211 = vpow2.f32 %v157_v23 }
 0x256   :  { %v212_v24 = vpop.eup %211 }
 0x257   :  { %v159_v25 = vsel %vm152_vm3, %v212_v24, 0.0 }
 0x258   :  { %160 = vadd.xlane.f32.xlu0 %v159_v25 }
 0x2e5   :  { %v161_v26 = vpop.xlane.xlu0 %160 }
 0x2e6   :  { %213 = vrcp.f32 %v161_v26 }
 0x2f0   :  { %v214_v27 = vpop.eup %213 }
 0x2f1   :  { %v163_v28 = vmul.f32 %v214_v27, %v212_v24 }
 0x2f3   :  { %164 = vst [vmem:[#allocation2] sm:$0x3] %v163_v28 }
 0x2f4   :  { %226 = shalt.err (!%p223_p4)
}
 0x2f5   :  { %s227_s30 = scalar_lea.hbm %s307_s5, 32 }
 0x2f6   :  { %p228_p5 = scmp.ne.s32.totalorder %s307_s5, %s227_s30  ;;  %p231_p6 = scmp.lt.u32.totalorder %s227_s30, %s307_s5 }
 0x2f8   :  { %p233_p7 = pnand %p231_p6, %p228_p5 }
 0x2fa   :  { %236 = shalt.err (!%p233_p7)
}
 0x2fb   :  { %174 = dma.vmem_to_hbm [thread:$0]  %s172_s3, 32, %s307_s5, [#allocation3]  }
 0x2fc   :  { %237 = dma.done.wait [#allocation3], 32  }
 0x2fd   :  { %238 = vsyncadd [#allocation3], 4294967264 }
 0x2fe   :  { %178 = vsyncpa [#allocation3], 1 }

// kernel: bert_classifier_forward.5
= control target key start
LH: loop header
LB: loop body
LE: loop exit
PB: predicated region body
PF: predicated region fallthrough
CT: control target
= control target key end

     0   :  { %s1681_s29 = smov 0   ;;  %s1857_s0 = inlined_call_operand.vmem [shape: f32[16,32], index: 0, kind: input, shape index: {}]   ;;  %s1858_s1 = inlined_call_operand.vmem [shape: f32[2,1,8], index: 1, kind: input, shape index: {}]   ;;  %s1859_s2 = inlined_call_operand.vmem [shape: bf16[32,96], index: 2, kind: input, shape index: {}]   ;;  %s1860_s3 = inlined_call_operand.vmem [shape: f32[1,96], index: 3, kind: input, shape index: {}]   ;;  %s1861_s4 = inlined_call_operand.vmem [shape: bf16[32,32], index: 4, kind: input, shape index: {}]   ;;  %s1862_s5 = inlined_call_operand.vmem [shape: f32[1,32], index: 5, kind: input, shape index: {}]   ;;  %s1863_s6 = inlined_call_operand.vmem [shape: f32[1,32], index: 6, kind: input, shape index: {}]   ;;  %s1864_s7 = inlined_call_operand.vmem [shape: f32[1,32], index: 7, kind: input, shape index: {}]   ;;  %s1865_s8 = inlined_call_operand.vmem [shape: bf16[32,64], index: 8, kind: input, shape index: {}]   ;;  %s1866_s9 = inlined_call_operand.vmem [shape: f32[1,64], index: 9, kind: input, shape index: {}]   ;;  %s1867_s10 = inlined_call_operand.vmem [shape: bf16[64,32], index: 10, kind: input, shape index: {}]   ;;  %s1868_s11 = inlined_call_operand.vmem [shape: f32[1,32], index: 11, kind: input, shape index: {}]   ;;  %s1869_s12 = inlined_call_operand.vmem [shape: f32[1,32], index: 12, kind: input, shape index: {}]   ;;  %s1870_s13 = inlined_call_operand.vmem [shape: f32[1,32], index: 13, kind: input, shape index: {}]   ;;  %s1871_s14 = inlined_call_operand.vmem [shape: f32[16,32], index: 14, kind: output, shape index: {}]  }
   0x1 LB: > { %s1372_s30 = sadd.s32 4294967295, %s1588_s29   ;;  %p1376_p0 = scmp.ge.s32.totalorder %s1588_s29, 1  ;;  %s1588_s29 = sphi %s1681_s29, %s24_s29  }
   0x2   : > { %p419_p1 = scmp.lt.s32.totalorder %s1588_s29, 3 }
   0x4   : > { %p420_p2 = pnand %p1376_p0, %p419_p1 }
   0x5   : > { %v1550_v0 = vld [vmem:[%s1859_s2] sm:$0xff] (!%p420_p2)   ;;  %v1590_v1 = vmov (!%p420_p2), 0.0   ;;  %v1551_v2 = vld [vmem:[%s1859_s2 + $0x8] sm:$0xff] (!%p420_p2)   ;;  %vm1591_vm0 = vmmov (!%p420_p2), 0   ;;  %p466_p3 = scmp.lt.s32.totalorder (!%p420_p2), %s1372_s30, 1  ;;  %vm504_vm1 = vcmask (!%p420_p2), 261120  }
   0x6   : > { %423 = sbr.rel (%p420_p2) target bundleno = 2423 (0x977), region = 76  ;;  %1442 = vmatprep.subr.bf16.mxu0 (!%p420_p2), %v1590_v1  ;;  %1450 = vmatprep.subr.bf16.mxu1 (!%p420_p2), %v1590_v1  ;;  %v1379_v5 = vld [vmem:[%s1860_s3] ss:$0 sm:$0xff] (!%p420_p2)  ;;  %s1592_s25 = smov (!%p420_p2), 120   ;;  %vm552_vm2 = vcmask (!%p420_p2), 64512   ;;  %vm622_vm3 = vcmask (!%p420_p2), 1043456  }
   0x7   : > { %1443 = vmatpush3.bf16.msra.mxu0 (!%p420_p2), %v1550_v0  ;;  %1446 = vmatprep.mubr.msk.bf16.mxu0 (!%p420_p2), %vm1591_vm0, %v1590_v1  ;;  %s1593_s26 = smov (!%p420_p2), 96   ;;  %s1594_s27 = smov (!%p420_p2), 80   ;;  %vm1017_vm4 = vcmask (!%p420_p2), 130048   ;;  %vm1019_vm5 = vcmask (!%p420_p2), 195584   ;;  %vm1235_vm6 = vcmask (!%p420_p2), 523264  }
   0x8   : > { %1444 = vmatprep.subr.bf16.mxu0 (!%p420_p2), %v1590_v1  ;;  %1452 = vmatprep.mubr.msk.bf16.mxu1 (!%p420_p2), %vm1591_vm0, %v1590_v1  ;;  %s1595_s28 = smov (!%p420_p2), 88   ;;  %s1596_s15 = smov (!%p420_p2), 72  }
   0x9   : > { %s1597_s16 = smov (!%p420_p2), 112   ;;  %s1598_s17 = smov (!%p420_p2), 104  }
   0xa   : > { %s1600_s23 = smov (!%p420_p2), 64   ;;  %s1601_s24 = smov (!%p420_p2), 40  }
   0xb   : > { %1445 = vmatpush3.bf16.msra.mxu0 (!%p420_p2), %v1551_v2  ;;  %s1605_s18 = smov (!%p420_p2), 24  }
   0xc   : > { %1456 = vmatprep.subr.bf16.mxu0 (!%p420_p2), %v1590_v1 }
   0xd   : > { %s1873_s30 = smov (!%p466_p3, %s1372_s30), 1 }
   0xe   : > { %s1377_s19 = sshll.u32 %s1873_s30, 3  ;;  %s472_s21 = scalar_lea.vmem %s1858_s1, %s1873_s30 }
   0xf   : > { %s469_s22 = scalar_lea.vmem %s1857_s0, %s1377_s19  ;;  %v1384_v24 = vld [vmem:[%s472_s21] ss:$0 sm:$0xff] }
  0x10   : > { %v1711_v3 = vld [vmem:[%s469_s22] sm:$0xff]  ;;  %s1599_s22 = smov 56  }
  0x11   : > { %v480_v4 = vpack.c.bf16 %v1711_v3, %v1711_v3 }
  0x13   : > { %1447 = vmatmul.mubr.msk.bf16.vlgmr.msra.gmra.mrb[0].mxu0 %vm504_vm1, %v480_v4 }
  0x14   : > { %1458 = vmatprep.mubr.msk.bf16.mxu0 %vm1591_vm0, %v1590_v1 }
  0xe6   : > { %v542_v6 = vpop.f32.mrb[0].mxu0 }
  0xe7   : > { %v543_v7 = vadd.f32 %v1379_v5, %v542_v6  ;;  %v1448_v8 = vpop.f32.mrb[1].mxu0 }
  0xe8   : > { %v545_v9 = vpop.f32.mrb[2].mxu0 }
  0xe9   : > { %v1721_v10 = vpack.c.bf16 %v543_v7, %v543_v7  ;;  %v1449_v11 = vpop.f32.mrb[3].mxu0 }
  0xeb   : > { %668 = vrot.lane.b32.xlu1 %v1721_v10, %s1592_s25  ;;  %550 = vrot.lane.b32.xlu0 %v1721_v10, %s1593_s26  ;;  %s1602_s25 = smov 48   ;;  %s1603_s26 = smov 8  }
  0xef   : > { %782 = vrot.lane.b32.xlu1 %v1721_v10, %s1594_s27  ;;  %670 = vrot.lane.b32.xlu0 %v1721_v10, %s1595_s28 }
  0xf3   : > { %894 = vrot.lane.b32.xlu1 %v1721_v10, %s1596_s15  ;;  %780 = vrot.lane.b32.xlu0 %v1721_v10, %s1597_s16 }
  0xf7   : > { %892 = vrot.lane.b32.xlu0 %v1721_v10, %s1598_s17  ;;  %s1604_s17 = smov 16  }
 0x15d   : > { %v551_v12 = vpop.permute.xlu0 %550  ;;  %v669_v15 = vpop.permute.xlu1 %668 }
 0x15e   : > { %v557_v13 = vsel %vm552_vm2, %v551_v12, 0 }
 0x15f   : > { %1451 = vmatpush3.bf16.xpose.msra.mxu1 %v557_v13 }
 0x160   : > { %1462 = vmatprep.subr.bf16.mxu1 %v1590_v1 }
 0x161   : > { %v671_v14 = vpop.permute.xlu0 %670  ;;  %v783_v17 = vpop.permute.xlu1 %782 }
 0x162   : > { %v676_v16 = vsel %vm552_vm2, %v671_v14, 0  ;;  %v788_v18 = vsel %vm552_vm2, %v783_v17, 0 }
 0x165   : > { %v895_v19 = vpop.permute.xlu1 %894  ;;  %v781_v20 = vpop.permute.xlu0 %780 }
 0x166   : > { %1453 = vmatmul.mubr.msk.bf16.vlgmr.msra.gmra.mrb[0].mxu1 %vm552_vm2, %v1721_v10  ;;  %v900_v21 = vsel %vm552_vm2, %v895_v19, 0 }
 0x167   : > { %1463 = vmatpush3.bf16.xpose.msra.mxu1 %v676_v16  ;;  %1464 = vmatprep.mubr.msk.bf16.mxu1 %vm1591_vm0, %v1590_v1 }
 0x168   : > { %1474 = vmatprep.subr.bf16.mxu1 %v1590_v1 }
 0x169   : > { %v893_v22 = vpop.permute.xlu0 %892 }
 0x16e   : > { %1465 = vmatmul.mubr.msk.bf16.vlgmr.msra.gmra.mrb[4].mxu1 %vm552_vm2, %v669_v15 }
 0x16f   : > { %1475 = vmatpush3.bf16.xpose.msra.mxu1 %v788_v18  ;;  %1476 = vmatprep.mubr.msk.bf16.mxu1 %vm1591_vm0, %v1590_v1 }
 0x170   : > { %1486 = vmatprep.subr.bf16.mxu1 %v1590_v1 }
 0x176   : > { %1477 = vmatmul.mubr.msk.bf16.vlgmr.msra.gmra.mrb[8].mxu1 %vm552_vm2, %v781_v20 }
 0x177   : > { %1487 = vmatpush3.bf16.xpose.msra.mxu1 %v900_v21  ;;  %1488 = vmatprep.mubr.msk.bf16.mxu1 %vm1591_vm0, %v1590_v1 }
 0x178   : > { %1498 = vmatprep.subr.bf16.mxu1 %v1590_v1 }
 0x17e   : > { %1489 = vmatmul.mubr.msk.bf16.vlgmr.msra.gmra.mrb[12].mxu1 %vm552_vm2, %v893_v22 }
 0x17f   : > { %1502 = vmatprep.mubr.msk.bf16.mxu1 %vm1591_vm0, %v1590_v1 }
 0x239   : > { %v593_v23 = vpop.f32.mrb[0].mxu1 }
 0x23a   : > { %v599_v25 = vmul.f32 0.35355338, %v593_v23  ;;  %v1454_v26 = vpop.f32.mrb[1].mxu1 }
 0x23b   : > { %v596_v27 = vpop.f32.mrb[2].mxu1 }
 0x23c   : > { %v1455_v28 = vpop.f32.mrb[3].mxu1  ;;  %v606_v29 = vadd.f32 %v1384_v24, %v599_v25 }
 0x23e   : > { %v607_v30 = vsel %vm552_vm2, %v606_v29, -inf }
 0x23f   : > { %608 = vmax.xlane.f32.xlu1 %v607_v30 }
 0x241   : > { %v712_v31 = vpop.f32.mrb[4].mxu1 }
 0x242   : > { %v718_v32 = vmul.f32 0.35355338, %v712_v31  ;;  %v1466_v33 = vpop.f32.mrb[5].mxu1 }
 0x243   : > { %v715_v34 = vpop.f32.mrb[6].mxu1 }
 0x244   : > { %v1467_v35 = vpop.f32.mrb[7].mxu1  ;;  %v719_v36 = vadd.f32 %v1384_v24, %v718_v32  ;;  %v1552_v34 = vld [vmem:[%s1861_s4] sm:$0xff]  }
 0x245   : > { %1499 = vmatpush3.bf16.msra.mxu1 %v1552_v34 }
 0x246   : > { %v720_v37 = vsel %vm552_vm2, %v719_v36, -inf  ;;  %1500 = vmatprep.subr.bf16.mxu1 %v1590_v1 }
 0x247   : > { %721 = vmax.xlane.f32.xlu0 %v720_v37 }
 0x249   : > { %v824_v38 = vpop.f32.mrb[8].mxu1 }
 0x24a   : > { %v830_v39 = vmul.f32 0.35355338, %v824_v38  ;;  %v1478_v40 = vpop.f32.mrb[9].mxu1 }
 0x24b   : > { %v827_v41 = vpop.f32.mrb[10].mxu1 }
 0x24c   : > { %v1479_v42 = vpop.f32.mrb[11].mxu1  ;;  %v831_v43 = vadd.f32 %v1384_v24, %v830_v39 }
 0x24e   : > { %v832_v44 = vsel %vm552_vm2, %v831_v43, -inf }
 0x24f   : > { %833 = vmax.xlane.f32.xlu0 %v832_v44 }
 0x250   : > { %730 = vrot.lane.b32.xlu1 %v1721_v10, %s1599_s22  ;;  %s476_s22 = scalar_lea.vmem %s1871_s14, %s1377_s19 }
 0x251   : > { %v936_v45 = vpop.f32.mrb[12].mxu1 }
 0x252   : > { %v1490_v46 = vpop.f32.mrb[13].mxu1  ;;  %v942_v49 = vmul.f32 0.35355338, %v936_v45 }
 0x253   : > { %v939_v47 = vpop.f32.mrb[14].mxu1 }
 0x254   : > { %v1491_v48 = vpop.f32.mrb[15].mxu1  ;;  %v943_v50 = vadd.f32 %v1384_v24, %v942_v49 }
 0x256   : > { %v944_v51 = vsel %vm552_vm2, %v943_v50, -inf }
 0x265   : > { %617 = vrot.lane.b32.xlu0 %v1721_v10, %s1600_s23 }
 0x269   : > { %954 = vrot.lane.b32.xlu0 %v1721_v10, %s1601_s24 }
 0x274   : > { %945 = vmax.xlane.f32.xlu1 %v944_v51 }
 0x285   : > { %842 = vrot.lane.b32.xlu1 %v1721_v10, %s1602_s25 }
 0x2cc   : > { %v609_v52 = vpop.xlane.xlu1 %608 }
 0x2cd   : > { %v610_v53 = vsub.f32 %v606_v29, %v609_v52 }
 0x2cf   : > { %v611_v54 = vmul.f32 1.442695, %v610_v53 }
 0x2d0   : > { %v731_v0 = vpop.permute.xlu1 %730 }
 0x2d1   : > { %1560 = vpow2.f32 %v611_v54  ;;  %v736_v6 = vsel %vm622_vm3, %v731_v0, 0 }
 0x2d4   : > { %v722_v55 = vpop.xlane.xlu0 %721 }
 0x2d5   : > { %v723_v56 = vsub.f32 %v719_v36, %v722_v55  ;;  %v1553_v36 = vld [vmem:[%s1861_s4 + $0x8] sm:$0xff]  }
 0x2d6   : > { %1501 = vmatpush3.bf16.msra.mxu1 %v1553_v36 }
 0x2d7   : > { %v724_v57 = vmul.f32 1.442695, %v723_v56  ;;  %1514 = vmatprep.subr.bf16.mxu1 %v1590_v1 }
 0x2d9   : > { %1562 = vpow2.f32 %v724_v57 }
 0x2db   : > { %v1561_v61 = vpop.eup %1560 }
 0x2dc   : > { %v834_v58 = vpop.xlane.xlu0 %833  ;;  %v616_v4 = vpack.c.bf16 %v1561_v61, %v1561_v61  ;;  %v613_v7 = vsel %vm552_vm2, %v1561_v61, 0.0 }
 0x2dd   : > { %v835_v59 = vsub.f32 %v831_v43, %v834_v58 }
 0x2df   : > { %v836_v60 = vmul.f32 1.442695, %v835_v59  ;;  %v1392_v59 = vld [vmem:[%s1862_s5] ss:$0 sm:$0xff] }
 0x2e0   : > { %v618_v62 = vpop.permute.xlu0 %617 }
 0x2e1   : > { %1564 = vpow2.f32 %v836_v60  ;;  %v624_v63 = vsel %vm622_vm3, %v618_v62, 0 }
 0x2e2   : > { %1457 = vmatpush3.bf16.msra.mxu0 %v624_v63 }
 0x2e3   : > { %v1563_v2 = vpop.eup %1562  ;;  %1468 = vmatprep.subr.bf16.mxu0 %v1590_v1 }
 0x2e4   : > { %v726_v5 = vsel %vm552_vm2, %v1563_v2, 0.0  ;;  %v729_v9 = vpack.c.bf16 %v1563_v2, %v1563_v2  ;;  %v955_v16 = vpop.permute.xlu0 %954 }
 0x2e5   : > { %727 = vadd.xlane.f32.xlu1 %v726_v5  ;;  %1459 = vmatmul.mubr.msk.bf16.vlgmr.msra.gmra.mrb[4].mxu0 %vm552_vm2, %v616_v4  ;;  %v960_v18 = vsel %vm622_vm3, %v955_v16, 0 }
 0x2e6   : > { %1469 = vmatpush3.bf16.msra.mxu0 %v736_v6  ;;  %1470 = vmatprep.mubr.msk.bf16.mxu0 %vm1591_vm0, %v1590_v1 }
 0x2e7   : > { %1480 = vmatprep.subr.bf16.mxu0 %v1590_v1 }
 0x2e9   : > { %614 = vadd.xlane.f32.xlu1 %v613_v7 }
 0x2eb   : > { %v1565_v8 = vpop.eup %1564 }
 0x2ec   : > { %v838_v10 = vsel %vm552_vm2, %v1565_v8, 0.0  ;;  %v841_v17 = vpack.c.bf16 %v1565_v8, %v1565_v8 }
 0x2ed   : > { %839 = vadd.xlane.f32.xlu0 %v838_v10  ;;  %1471 = vmatmul.mubr.msk.bf16.vlgmr.msra.gmra.mrb[8].mxu0 %vm552_vm2, %v729_v9  ;;  %v1554_v10 = vld [vmem:[%s1865_s8] sm:$0xff]  }
 0x2ee   : > { %1482 = vmatprep.mubr.msk.bf16.mxu0 %vm1591_vm0, %v1590_v1 }
 0x301   : > { %v946_v11 = vpop.xlane.xlu1 %945 }
 0x302   : > { %v947_v12 = vsub.f32 %v943_v50, %v946_v11 }
 0x304   : > { %v948_v13 = vmul.f32 1.442695, %v947_v12 }
 0x305   : > { %v843_v14 = vpop.permute.xlu1 %842 }
 0x306   : > { %1566 = vpow2.f32 %v948_v13  ;;  %v848_v15 = vsel %vm622_vm3, %v843_v14, 0 }
 0x307   : > { %1481 = vmatpush3.bf16.msra.mxu0 %v848_v15  ;;  %v1396_v15 = vld [vmem:[%s1863_s6] ss:$0 sm:$0xff] }
 0x308   : > { %1492 = vmatprep.subr.bf16.mxu0 %v1590_v1 }
 0x30a   : > { %1483 = vmatmul.mubr.msk.bf16.vlgmr.msra.gmra.mrb[12].mxu0 %vm552_vm2, %v841_v17  ;;  %v1397_v17 = vld [vmem:[%s1864_s7] ss:$0 sm:$0xff] }
 0x30b   : > { %1493 = vmatpush3.bf16.msra.mxu0 %v960_v18  ;;  %1494 = vmatprep.mubr.msk.bf16.mxu0 %vm1591_vm0, %v1590_v1 }
 0x30c   : > { %1506 = vmatprep.subr.bf16.mxu0 %v1590_v1 }
 0x310   : > { %v1567_v19 = vpop.eup %1566 }
 0x311   : > { %v950_v20 = vsel %vm552_vm2, %v1567_v19, 0.0  ;;  %v953_v21 = vpack.c.bf16 %v1567_v19, %v1567_v19 }
 0x312   : > { %951 = vadd.xlane.f32.xlu0 %v950_v20 }
 0x313   : > { %1495 = vmatmul.mubr.msk.bf16.vlgmr.msra.gmra.mrb[16].mxu0 %vm552_vm2, %v953_v21  ;;  %v1556_v21 = vld [vmem:[%s1867_s10] sm:$0xff]  }
 0x314   : > { %1510 = vmatprep.mubr.msk.bf16.mxu0 %vm1591_vm0, %v1590_v1  ;;  %1507 = vmatpush3.bf16.msra.mxu0 %v1554_v10 }
 0x315   : > { %1508 = vmatprep.subr.bf16.mxu0 %v1590_v1 }
 0x372   : > { %v728_v22 = vpop.xlane.xlu1 %727 }
 0x373   : > { %1568 = vrcp.f32 %v728_v22  ;;  %v1557_v22 = vld [vmem:[%s1867_s10 + $0x8] sm:$0xff]  }
 0x376   : > { %v615_v49 = vpop.xlane.xlu1 %614 }
 0x37a   : > { %v840_v33 = vpop.xlane.xlu0 %839 }
 0x37b   : > { %1570 = vrcp.f32 %v840_v33 }
 0x37d   : > { %v1569_v27 = vpop.eup %1568 }
 0x385   : > { %v1571_v37 = vpop.eup %1570 }
 0x39f   : > { %v952_v35 = vpop.xlane.xlu0 %951 }
 0x3a0   : > { %1572 = vrcp.f32 %v952_v35 }
 0x3a1   : > { %1574 = vrcp.f32 %v615_v49 }
 0x3aa   : > { %v1573_v43 = vpop.eup %1572 }
 0x3ab   : > { %v1575_v50 = vpop.eup %1574 }
 0x3b8   : > { %v660_v23 = vpop.f32.mrb[4].mxu0 }
 0x3b9   : > { %v1460_v24 = vpop.f32.mrb[5].mxu0  ;;  %v667_v53 = vmul.f32 %v1575_v50, %v660_v23  ;;  %v1558_v23 = vld [vmem:[%s1867_s10 + $0x10] sm:$0xff]  }
 0x3ba   : > { %v663_v25 = vpop.f32.mrb[6].mxu0  ;;  %v1559_v24 = vld [vmem:[%s1867_s10 + $0x18] sm:$0xff]  }
 0x3bb   : > { %v1461_v26 = vpop.f32.mrb[7].mxu0  ;;  %v1398_v25 = vld [vmem:[%s1866_s9] ss:$0 sm:$0xff] }
 0x3c0   : > { %v772_v28 = vpop.f32.mrb[8].mxu0 }
 0x3c1   : > { %v779_v29 = vmul.f32 %v1569_v27, %v772_v28  ;;  %v1472_v30 = vpop.f32.mrb[9].mxu0 }
 0x3c2   : > { %v775_v31 = vpop.f32.mrb[10].mxu0 }
 0x3c3   : > { %1005 = vrot.lane.b32.xlu0 %v779_v29, %s1603_s26  ;;  %v1473_v32 = vpop.f32.mrb[11].mxu0 }
 0x3dd   : > { %v884_v38 = vpop.f32.mrb[12].mxu0 }
 0x3de   : > { %v891_v39 = vmul.f32 %v1571_v37, %v884_v38  ;;  %v1484_v40 = vpop.f32.mrb[13].mxu0 }
 0x3df   : > { %v887_v41 = vpop.f32.mrb[14].mxu0  ;;  %v1402_v40 = vld [vmem:[%s1868_s11] ss:$0 sm:$0xff] }
 0x3e0   : > { %1009 = vrot.lane.b32.xlu1 %v891_v39, %s1604_s17  ;;  %v1485_v42 = vpop.f32.mrb[15].mxu0 }
 0x3e6   : > { %v996_v44 = vpop.f32.mrb[16].mxu0 }
 0x3e7   : > { %v1003_v45 = vmul.f32 %v1573_v43, %v996_v44  ;;  %v1496_v46 = vpop.f32.mrb[17].mxu0 }
 0x3e8   : > { %v999_v47 = vpop.f32.mrb[18].mxu0 }
 0x3e9   : > { %1013 = vrot.lane.b32.xlu1 %v1003_v45, %s1605_s18  ;;  %v1497_v48 = vpop.f32.mrb[19].mxu0 }
 0x435   : > { %v1006_v51 = vpop.permute.xlu0 %1005 }
 0x436   : > { %v1016_v54 = vsel %vm552_vm2, %v667_v53, %v1006_v51 }
 0x452   : > { %v1010_v52 = vpop.permute.xlu1 %1009 }
 0x453   : > { %v1018_v55 = vsel %vm1017_vm4, %v1016_v54, %v1010_v52 }
 0x45b   : > { %v1014_v56 = vpop.permute.xlu1 %1013 }
 0x45c   : > { %v1020_v57 = vsel %vm1019_vm5, %v1018_v55, %v1014_v56 }
 0x45d   : > { %v1021_v58 = vpack.c.bf16 %v1020_v57, %v1020_v57  ;;  %v1408_v57 = vld [vmem:[%s1869_s12] ss:$0 sm:$0xff] }
 0x45f   : > { %1503 = vmatmul.mubr.msk.bf16.vlgmr.msra.gmra.mrb[16].mxu1 %vm504_vm1, %v1021_v58 }
 0x460   : > { %1522 = vmatprep.mubr.msk.bf16.mxu1 %vm1591_vm0, %v1590_v1  ;;  %1515 = vmatpush3.bf16.msra.mxu1 %v1556_v21 }
 0x461   : > { %1516 = vmatprep.subr.bf16.mxu1 %v1590_v1 }
 0x464   : > { %1517 = vmatpush3.bf16.msra.mxu1 %v1557_v22 }
 0x465   : > { %1518 = vmatprep.subr.bf16.mxu1 %v1590_v1 }
 0x468   : > { %1519 = vmatpush3.bf16.msra.mxu1 %v1558_v23 }
 0x469   : > { %1520 = vmatprep.subr.bf16.mxu1 %v1590_v1 }
 0x46c   : > { %1521 = vmatpush3.bf16.msra.mxu1 %v1559_v24 }
 0x532   : > { %v1082_v60 = vpop.f32.mrb[16].mxu1 }
 0x533   : > { %v1083_v61 = vadd.f32 %v1392_v59, %v1082_v60  ;;  %v1504_v62 = vpop.f32.mrb[17].mxu1  ;;  %v1409_v59 = vld [vmem:[%s1870_s13] ss:$0 sm:$0xff] }
 0x534   : > { %v1085_v63 = vpop.f32.mrb[18].mxu1 }
 0x535   : > { %v1505_v0 = vpop.f32.mrb[19].mxu1  ;;  %v1088_v2 = vadd.f32 %v1083_v61, %v1711_v3  ;;  %v1555_v3 = vld [vmem:[%s1865_s8 + $0x8] sm:$0xff]  }
 0x536   : > { %1509 = vmatpush3.bf16.msra.mxu0 %v1555_v3 }
 0x537   : > { %v1091_v4 = vsel %vm504_vm1, %v1088_v2, 0.0 }
 0x538   : > { %1092 = vadd.xlane.f32.xlu0 %v1091_v4 }
 0x5c5   : > { %v1093_v5 = vpop.xlane.xlu0 %1092 }
 0x5c6   : > { %v1095_v6 = vmul.f32 0.03125, %v1093_v5 }
 0x5c8   : > { %v1096_v7 = vsub.f32 %v1088_v2, %v1095_v6 }
 0x5ca   : > { %v1097_v8 = vmul.f32 %v1096_v7, %v1096_v7 }
 0x5cc   : > { %v1098_v9 = vsel %vm504_vm1, %v1097_v8, 0.0 }
 0x5cd   : > { %1099 = vadd.xlane.f32.xlu1 %v1098_v9 }
 0x65a   : > { %v1100_v11 = vpop.xlane.xlu1 %1099 }
 0x65b   : > { %v1101_v12 = vmul.f32 0.03125, %v1100_v11 }
 0x65d   : > { %v1102_v13 = vadd.f32 1e-12, %v1101_v12 }
 0x65f   : > { %1576 = vrsqrt.f32 %v1102_v13 }
 0x669   : > { %v1577_v14 = vpop.eup %1576 }
 0x66a   : > { %v1104_v16 = vmul.f32 %v1577_v14, %v1096_v7 }
 0x66c   : > { %v1111_v18 = vmul.f32 %v1396_v15, %v1104_v16 }
 0x66e   : > { %v1118_v19 = vadd.f32 %v1397_v17, %v1111_v18 }
 0x670   : > { %v1119_v20 = vpack.c.bf16 %v1118_v19, %v1118_v19 }
 0x672   : > { %1511 = vmatmul.mubr.msk.bf16.vlgmr.msra.gmra.mrb[20].mxu0 %vm504_vm1, %v1119_v20 }
 0x745   : > { %v1180_v26 = vpop.f32.mrb[20].mxu0 }
 0x746   : > { %v1181_v27 = vadd.f32 %v1398_v25, %v1180_v26  ;;  %v1512_v28 = vpop.f32.mrb[21].mxu0 }
 0x747   : > { %v1183_v29 = vpop.f32.mrb[22].mxu0 }
 0x748   : > { %v1186_v30 = vmul.f32 %v1181_v27, %v1181_v27  ;;  %v1513_v31 = vpop.f32.mrb[23].mxu0 }
 0x74a   : > { %v1187_v32 = vmul.f32 %v1186_v30, %v1181_v27 }
 0x74c   : > { %v1188_v33 = vmul.f32 0.044715, %v1187_v32 }
 0x74e   : > { %v1189_v34 = vadd.f32 %v1188_v33, %v1181_v27 }
 0x750   : > { %v1190_v35 = vmul.f32 0.7978846, %v1189_v34 }
 0x752   : > { %1578 = vtanh.f32 %v1190_v35 }
 0x75c   : > { %v1579_v1 = vpop.eup %1578 }
 0x75d   : > { %v1192_v36 = vadd.f32 1.0, %v1579_v1 }
 0x75f   : > { %v1193_v37 = vmul.f32 0.5, %v1192_v36 }
 0x761   : > { %v1194_v38 = vmul.f32 %v1193_v37, %v1181_v27 }
 0x763   : > { %v1195_v39 = vpack.c.bf16 %v1194_v38, %v1194_v38 }
 0x765   : > { %1523 = vmatmul.mubr.msk.bf16.vlgmr.msra.gmra.mrb[20].mxu1 %vm1235_vm6, %v1195_v39 }
 0x838   : > { %v1273_v41 = vpop.f32.mrb[20].mxu1 }
 0x839   : > { %v1274_v42 = vadd.f32 %v1402_v40, %v1273_v41  ;;  %v1524_v43 = vpop.f32.mrb[21].mxu1 }
 0x83a   : > { %v1276_v44 = vpop.f32.mrb[22].mxu1 }
 0x83b   : > { %v1525_v45 = vpop.f32.mrb[23].mxu1  ;;  %v1279_v46 = vadd.f32 %v1274_v42, %v1118_v19 }
 0x83d   : > { %v1282_v47 = vsel %vm504_vm1, %v1279_v46, 0.0 }
 0x83e   : > { %1283 = vadd.xlane.f32.xlu0 %v1282_v47 }
 0x8cb   : > { %v1284_v48 = vpop.xlane.xlu0 %1283 }
 0x8cc   : > { %v1285_v49 = vmul.f32 0.03125, %v1284_v48 }
 0x8ce   : > { %v1286_v50 = vsub.f32 %v1279_v46, %v1285_v49 }
 0x8d0   : > { %v1287_v51 = vmul.f32 %v1286_v50, %v1286_v50 }
 0x8d2   : > { %v1288_v52 = vsel %vm504_vm1, %v1287_v51, 0.0 }
 0x8d3   : > { %1289 = vadd.xlane.f32.xlu0 %v1288_v52 }
 0x960   : > { %v1290_v53 = vpop.xlane.xlu0 %1289 }
 0x961   : > { %v1291_v54 = vmul.f32 0.03125, %v1290_v53 }
 0x963   : > { %v1292_v55 = vadd.f32 1e-12, %v1291_v54 }
 0x965   : > { %1580 = vrsqrt.f32 %v1292_v55 }
 0x96f   : > { %v1581_v56 = vpop.eup %1580 }
 0x970   : > { %v1294_v58 = vmul.f32 %v1581_v56, %v1286_v50 }
 0x972   : > { %v1301_v60 = vmul.f32 %v1408_v57, %v1294_v58 }
 0x974   : > { %v1308_v61 = vadd.f32 %v1409_v59, %v1301_v60 }
 0x976   : > { %1309 = vst.msk [vmem:[%s476_s22] sm:$0xff] %vm504_vm1, %v1308_v61 }
 0x977 PF: > { %s24_s29 = sadd.s32 1, %s1588_s29  }
 0x978   : > { %p21_p4 = scmp.ge.s32.totalorder %s24_s29, 4  }
 0x97a   :  { %23 = sbr.rel (!%p21_p4) target bundleno = 1 (0x1), region = 109 }

</bundles_post_ra>
